<compile_context>
chip_gen: v7x
topology: tpu7x:2x2x1
jax: 0.10.0
libtpu: 0.0.40
codegen_flags: <defaults>
</compile_context>

<pallas_src>
import numpy as np
import jax
import jax.numpy as jnp
from jax import lax
from jax.experimental import pallas as pl
from jax.experimental.pallas import tpu as pltpu


def _cdiv(a, b):
    return -(-a // b)


def _round_up(a, m):
    return _cdiv(a, m) * m


def _film_kernel(w_ref, x_ref, c3_ref, o_ref):
    """One (TB, *, TL) block per grid step.

    w_ref:  (2*ID, K3)     resident: conv taps + bias column (+ zero pad cols)
    x_ref:  (TB, ID, TL)
    c3_ref: (TB, K3, TL)   rows = [c[t-1]; c[t]; c[t+1]; ones; zeros]
    o_ref:  (TB, ID, TL)
    """
    tb, input_dim, _ = x_ref.shape
    w = w_ref[...]
    # TB is small (<= 8); static unroll keeps each matmul a plain 2-D MXU op.
    for b in range(tb):
        y = jnp.dot(w, c3_ref[b], preferred_element_type=jnp.float32)  # (2*ID, TL)
        m = y[:input_dim, :]
        s = y[input_dim:, :]
        xb = x_ref[b].astype(jnp.float32)
        o_ref[b] = (xb * s + m).astype(o_ref.dtype)


def film(x, c, weight, bias, *, tl_cap=2048, tb_cap=8, vmem_budget=8 * 1024 * 1024):
    """x: (B, input_dim, L); c: (B, attribute_dim, L);
    weight: (2*input_dim, attribute_dim, 3) PyTorch Conv1d layout; bias: (2*input_dim,).
    Returns (B, input_dim, L) in x.dtype, matching FiLM.forward."""
    B, input_dim, L = x.shape
    _, attribute_dim, _ = c.shape
    out_dim = 2 * input_dim

    # ---- fold the 3 conv taps + bias into one resident matmul operand ----
    # Column block k of w_cat holds W[:, :, k]; next column holds the bias.
    # Matching rows of c3 are [c[t-1]; c[t]; c[t+1]; ones], so
    #   w_cat @ c3[b] == Conv1d(k=3, pad=1)(c)[b] + bias.
    k_raw = 3 * attribute_dim + 1
    K3 = _round_up(k_raw, 8)                       # sublane-aligned contraction dim
    w_taps = jnp.transpose(weight, (0, 2, 1)).reshape(out_dim, 3 * attribute_dim)
    w_cat = jnp.concatenate(
        [w_taps.astype(jnp.float32),
         bias.reshape(out_dim, 1).astype(jnp.float32),
         jnp.zeros((out_dim, K3 - k_raw), jnp.float32)], axis=1)     # (2*ID, K3)

    # ---- tile selection: lane-dense TL, coarse TB, fits default scoped VMEM ----
    L128 = _round_up(L, 128)
    n_l = _cdiv(L128, tl_cap)
    TL = _round_up(_cdiv(L128, n_l), 128)
    L_pad = TL * n_l

    x_bytes = jnp.dtype(x.dtype).itemsize
    c_bytes = jnp.dtype(c.dtype).itemsize
    # double-buffered x + out (ID each) and c3 (K3) per batch row per step
    per_batch_bytes = 2 * TL * (2 * input_dim * x_bytes + K3 * c_bytes)
    TB = int(min(B, tb_cap, max(1, vmem_budget // per_batch_bytes)))
    B_pad = _round_up(B, TB)

    # ---- wrapper-side shifted/stacked conditioning (no halo needed in-kernel) ----
    zcol = jnp.zeros((B, attribute_dim, 1), c.dtype)
    c_prev = jnp.concatenate([zcol, c[:, :, : L - 1]], axis=2)   # c[t-1], 0 at t=0
    c_next = jnp.concatenate([c[:, :, 1:], zcol], axis=2)        # c[t+1], 0 at t=L-1
    ones = jnp.ones((B, 1, L), c.dtype)
    c3 = jnp.concatenate([c_prev, c, c_next, ones], axis=1)      # (B, 3*AD+1, L)
    c3 = jnp.pad(c3, ((0, B_pad - B), (0, K3 - k_raw), (0, L_pad - L)))
    x_p = jnp.pad(x, ((0, B_pad - B), (0, 0), (0, L_pad - L)))   # native dtype, no up-cast

    grid = (B_pad // TB, L_pad // TL)
    grid_spec = pltpu.PrefetchScalarGridSpec(
        num_scalar_prefetch=0,
        grid=grid,
        in_specs=[
            pl.BlockSpec((out_dim, K3), lambda i, j: (0, 0)),            # resident weights
            pl.BlockSpec((TB, input_dim, TL), lambda i, j: (i, 0, j)),   # x
            pl.BlockSpec((TB, K3, TL), lambda i, j: (i, 0, j)),          # c3
        ],
        out_specs=pl.BlockSpec((TB, input_dim, TL), lambda i, j: (i, 0, j)),
    )

    out = pl.pallas_call(
        _film_kernel,
        out_shape=jax.ShapeDtypeStruct((B_pad, input_dim, L_pad), x.dtype),
        grid_spec=grid_spec,
        compiler_params=pltpu.CompilerParams(
            dimension_semantics=("parallel", "parallel")),
    )(w_cat, x_p, c3)

    return out[:B, :, :L]


def film_ref(x, c, weight, bias):
    """Pure-JAX reference mirroring the PyTorch module."""
    y = lax.conv_general_dilated(
        c.astype(jnp.float32), weight.astype(jnp.float32),
        window_strides=(1,), padding=((1, 1),),
        dimension_numbers=("NCH", "OIH", "NCH"))
    y = y + bias.astype(jnp.float32)[None, :, None]
    input_dim = x.shape[1]
    m = y[:, :input_dim, :]
    s = y[:, input_dim:, :]
    return (x.astype(jnp.float32) * s + m).astype(x.dtype)


if __name__ == "__main__":
    key = jax.random.PRNGKey(0)
    B, INPUT_DIM, ATTR_DIM, L = 2, 16, 8, 128
    k1, k2, k3, k4 = jax.random.split(key, 4)

    x = jax.random.normal(k1, (B, INPUT_DIM, L), dtype=jnp.float32)
    c = jax.random.normal(k2, (B, ATTR_DIM, L), dtype=jnp.float32)

    # Conv1d(attribute_dim, 2*input_dim, kernel_size=3) params, PyTorch init range.
    fan_in = ATTR_DIM * 3
    bound = 1.0 / np.sqrt(fan_in)
    weight = jax.random.uniform(k3, (2 * INPUT_DIM, ATTR_DIM, 3),
                                dtype=jnp.float32, minval=-bound, maxval=bound)
    bias = jax.random.uniform(k4, (2 * INPUT_DIM,),
                              dtype=jnp.float32, minval=-bound, maxval=bound)

    out = film(x, c, weight, bias)
    jax.block_until_ready(out)
    assert out.shape == (B, INPUT_DIM, L)

    ref = film_ref(x, c, weight, bias)
    np.testing.assert_allclose(np.asarray(out), np.asarray(ref), atol=1e-4, rtol=1e-4)

    print("KERNEL_OK")
</pallas_src>

<mosaic_0001>
module attributes {stable_mosaic.version = 11 : i64} {
  func.func @_film_kernel(%arg0: i32, %arg1: i32, %arg2: memref<32x32xf32, #tpu.memory_space<vmem>>, %arg3: memref<2x16x128xf32, #tpu.memory_space<vmem>>, %arg4: memref<2x32x128xf32, #tpu.memory_space<vmem>>, %arg5: memref<2x16x128xf32, #tpu.memory_space<vmem>>) attributes {dimension_semantics = [#tpu.dimension_semantics<parallel>, #tpu.dimension_semantics<parallel>], iteration_bounds = array<i64: 1, 1>, scalar_prefetch = 0 : i64, scratch_operands = 0 : i64, tpu.core_type = #tpu.core_type<tc>, window_params = [{pipeline_mode = #tpu.pipeline_mode<synchronous>, transform_indices = @transform_0, window_bounds = array<i64: 32, 32>}, {transform_indices = @transform_1, window_bounds = array<i64: 2, 16, 128>}, {transform_indices = @transform_2, window_bounds = array<i64: 2, 32, 128>}, {transform_indices = @transform_3, window_bounds = array<i64: 2, 16, 128>}]} {
    %c0 = arith.constant 0 : index
    %c0_0 = arith.constant 0 : index
    %0 = vector.load %arg2[%c0, %c0_0] : memref<32x32xf32, #tpu.memory_space<vmem>>, vector<32x32xf32>
    %c0_1 = arith.constant 0 : index
    %c0_2 = arith.constant 0 : index
    %c0_3 = arith.constant 0 : index
    %1 = vector.load %arg4[%c0_1, %c0_2, %c0_3] : memref<2x32x128xf32, #tpu.memory_space<vmem>>, vector<1x32x128xf32>
    %2 = vector.shape_cast %1 : vector<1x32x128xf32> to vector<32x128xf32>
    %cst = arith.constant dense<0.000000e+00> : vector<32x128xf32>
    %3 = tpu.matmul %0, %2, %cst {dimension_numbers = #tpu.dot_dimension_numbers<[1], [0], [0], [1], [0, 0, 1, 1], [], []>} : vector<32x32xf32>, vector<32x128xf32>, vector<32x128xf32> -> vector<32x128xf32>
    %4 = vector.extract_strided_slice %3 {offsets = [0, 0], sizes = [16, 128], strides = [1, 1]} : vector<32x128xf32> to vector<16x128xf32>
    %5 = vector.extract_strided_slice %3 {offsets = [16, 0], sizes = [16, 128], strides = [1, 1]} : vector<32x128xf32> to vector<16x128xf32>
    %c0_4 = arith.constant 0 : index
    %c0_5 = arith.constant 0 : index
    %c0_6 = arith.constant 0 : index
    %6 = vector.load %arg3[%c0_4, %c0_5, %c0_6] : memref<2x16x128xf32, #tpu.memory_space<vmem>>, vector<1x16x128xf32>
    %7 = vector.shape_cast %6 : vector<1x16x128xf32> to vector<16x128xf32>
    %8 = arith.mulf %7, %5 : vector<16x128xf32>
    %9 = arith.addf %8, %4 : vector<16x128xf32>
    %c0_7 = arith.constant 0 : index
    %c0_8 = arith.constant 0 : index
    %c0_9 = arith.constant 0 : index
    %10 = vector.load %arg5[%c0_7, %c0_8, %c0_9] : memref<2x16x128xf32, #tpu.memory_space<vmem>>, vector<1x16x128xf32>
    %11 = vector.shape_cast %10 : vector<1x16x128xf32> to vector<16x128xf32>
    %12 = vector.shape_cast %9 : vector<16x128xf32> to vector<1x16x128xf32>
    tpu.vector_store %arg5[%c0_7, %c0_8, %c0_9], %12 {strides = array<i32>} : memref<2x16x128xf32, #tpu.memory_space<vmem>>, vector<1x16x128xf32>,
    %c1 = arith.constant 1 : index
    %c0_10 = arith.constant 0 : index
    %c0_11 = arith.constant 0 : index
    %13 = vector.load %arg4[%c1, %c0_10, %c0_11] : memref<2x32x128xf32, #tpu.memory_space<vmem>>, vector<1x32x128xf32>
    %14 = vector.shape_cast %13 : vector<1x32x128xf32> to vector<32x128xf32>
    %cst_12 = arith.constant dense<0.000000e+00> : vector<32x128xf32>
    %15 = tpu.matmul %0, %14, %cst_12 {dimension_numbers = #tpu.dot_dimension_numbers<[1], [0], [0], [1], [0, 0, 1, 1], [], []>} : vector<32x32xf32>, vector<32x128xf32>, vector<32x128xf32> -> vector<32x128xf32>
    %16 = vector.extract_strided_slice %15 {offsets = [0, 0], sizes = [16, 128], strides = [1, 1]} : vector<32x128xf32> to vector<16x128xf32>
    %17 = vector.extract_strided_slice %15 {offsets = [16, 0], sizes = [16, 128], strides = [1, 1]} : vector<32x128xf32> to vector<16x128xf32>
    %c1_13 = arith.constant 1 : index
    %c0_14 = arith.constant 0 : index
    %c0_15 = arith.constant 0 : index
    %18 = vector.load %arg3[%c1_13, %c0_14, %c0_15] : memref<2x16x128xf32, #tpu.memory_space<vmem>>, vector<1x16x128xf32>
    %19 = vector.shape_cast %18 : vector<1x16x128xf32> to vector<16x128xf32>
    %20 = arith.mulf %19, %17 : vector<16x128xf32>
    %21 = arith.addf %20, %16 : vector<16x128xf32>
    %c1_16 = arith.constant 1 : index
    %c0_17 = arith.constant 0 : index
    %c0_18 = arith.constant 0 : index
    %22 = vector.load %arg5[%c1_16, %c0_17, %c0_18] : memref<2x16x128xf32, #tpu.memory_space<vmem>>, vector<1x16x128xf32>
    %23 = vector.shape_cast %22 : vector<1x16x128xf32> to vector<16x128xf32>
    %24 = vector.shape_cast %21 : vector<16x128xf32> to vector<1x16x128xf32>
    tpu.vector_store %arg5[%c1_16, %c0_17, %c0_18], %24 {strides = array<i32>} : memref<2x16x128xf32, #tpu.memory_space<vmem>>, vector<1x16x128xf32>,
    return
  }
  func.func @transform_0(%arg0: i32, %arg1: i32) -> (i32, i32) {
    %c0_i32 = arith.constant 0 : i32
    %c0_i32_0 = arith.constant 0 : i32
    %c0_i32_1 = arith.constant 0 : i32
    return %c0_i32, %c0_i32_0 : i32, i32
  }
  func.func @transform_1(%arg0: i32, %arg1: i32) -> (i32, i32, i32) {
    %c0_i32 = arith.constant 0 : i32
    %c0_i32_0 = arith.constant 0 : i32
    return %arg0, %c0_i32, %arg1 : i32, i32, i32
  }
  func.func @transform_2(%arg0: i32, %arg1: i32) -> (i32, i32, i32) {
    %c0_i32 = arith.constant 0 : i32
    %c0_i32_0 = arith.constant 0 : i32
    return %arg0, %c0_i32, %arg1 : i32, i32, i32
  }
  func.func @transform_3(%arg0: i32, %arg1: i32) -> (i32, i32, i32) {
    %c0_i32 = arith.constant 0 : i32
    %c0_i32_0 = arith.constant 0 : i32
    return %arg0, %c0_i32, %arg1 : i32, i32, i32
  }
}

</mosaic_0001>

<bundles_post_ra>
// kernel: tpu_custom_call.1
= control target key start
LH: loop header
LB: loop body
LE: loop exit
PB: predicated region body
PF: predicated region fallthrough
CT: control target
= control target key end

     0   :  { %8 = vsyncpa [#allocation3], 0  ;;  %s557_s0 = inlined_call_operand.hbm [shape: f32[32,32], index: 0, kind: input, shape index: {}]   ;;  %s558_s1 = inlined_call_operand.hbm [shape: f32[2,16,128], index: 1, kind: input, shape index: {}]   ;;  %s559_s2 = inlined_call_operand.hbm [shape: f32[2,32,128], index: 2, kind: input, shape index: {}]   ;;  %s560_s3 = inlined_call_operand.hbm [shape: f32[2,16,128], index: 3, kind: output, shape index: {}]  }
   0x1   :  { %9 = vsyncpa [#allocation6], 0 }
   0x2   :  { %10 = vsyncpa [#allocation4], 0  ;;  %s456_s12 = smov [#allocation5]   ;;  %s457_s14 = smov [#allocation2]  }
   0x3   :  { %s28_s13 = sshll.u32 %s456_s12, 4  ;;  %s16_s15 = sshll.u32 %s457_s14, 4  ;;  %s29_s13 = int_to_ptr.vmem [resolvable:$true] %s28_s13  ;;  %s482_s15 = int_to_ptr.vmem [resolvable:$true] %s16_s15 }
   0x4   :  { %s362_s18 = scalar_lea.hbm %s558_s1, 512 }
   0x5   :  { %p363_p0 = scmp.ne.s32.totalorder %s558_s1, %s362_s18  ;;  %p366_p1 = scmp.lt.u32.totalorder %s362_s18, %s558_s1 }
   0x7   :  { %p368_p2 = pnand %p366_p1, %p363_p0 }
   0x9   :  { %371 = shalt.err (!%p368_p2)
}
   0xa   :  { %s372_s23 = scalar_lea.vmem %s29_s13, 512  ;;  %p377_p4 = scmp.lt.s32.totalorder %s29_s13, %s29_s13 }
   0xb   :  { %p373_p3 = scmp.ne.s32.totalorder %s29_s13, %s372_s23  ;;  %p378_p5 = scmp.lt.s32.totalorder %s372_s23, %s372_s23 }
   0xd   :  { %p379_p6 = por %p378_p5, %p377_p4 }
   0xf   :  { %p380_p7 = pnand %p379_p6, %p373_p3 }
  0x11   :  { %383 = shalt.err (!%p380_p7)
}
  0x12   :  { %s458_s24 = smov 128   ;;  %s459_s25 = smov 8  }
  0x13   :  { %34 = dma.hbm_to_vmem [thread:$0]  %s558_s1, 512, %s29_s13, [#allocation6], %s458_s24, %s458_s24, %s459_s25  }
  0x14   :  { %s384_s30 = scalar_lea.hbm %s557_s0, 512 }
  0x15   :  { %p385_p8 = scmp.ne.s32.totalorder %s557_s0, %s384_s30  ;;  %p388_p9 = scmp.lt.u32.totalorder %s384_s30, %s557_s0 }
  0x17   :  { %p390_p10 = pnand %p388_p9, %p385_p8 }
  0x19   :  { %393 = shalt.err (!%p390_p10)
}
  0x1a   :  { %s394_s8 = scalar_lea.vmem %s482_s15, 512  ;;  %p399_p12 = scmp.lt.s32.totalorder %s482_s15, %s482_s15 }
  0x1b   :  { %p395_p11 = scmp.ne.s32.totalorder %s482_s15, %s394_s8  ;;  %p400_p13 = scmp.lt.s32.totalorder %s394_s8, %s394_s8 }
  0x1d   :  { %p401_p0 = por %p400_p13, %p399_p12 }
  0x1f   :  { %p402_p1 = pnand %p401_p0, %p395_p11 }
  0x21   :  { %405 = shalt.err (!%p402_p1)
}
  0x22   :  { %22 = dma.hbm_to_vmem [thread:$0]  %s557_s0, 512, %s482_s15, [#allocation3], %s458_s24, %s458_s24, %s459_s25  }
  0x23   :  { %s460_s10 = smov [#allocation7]   ;;  %s406_s14 = scalar_lea.hbm %s559_s2, 1024 }
  0x24   :  { %s40_s11 = sshll.u32 %s460_s10, 4  ;;  %p407_p2 = scmp.ne.s32.totalorder %s559_s2, %s406_s14  ;;  %s41_s11 = int_to_ptr.vmem [resolvable:$true] %s40_s11 }
  0x25   :  { %p410_p3 = scmp.lt.u32.totalorder %s406_s14, %s559_s2 }
  0x27   :  { %p412_p4 = pnand %p410_p3, %p407_p2 }
  0x29   :  { %415 = shalt.err (!%p412_p4)
}
  0x2a   :  { %s416_s20 = scalar_lea.vmem %s41_s11, 1024  ;;  %p421_p6 = scmp.lt.s32.totalorder %s41_s11, %s41_s11 }
  0x2b   :  { %p417_p5 = scmp.ne.s32.totalorder %s41_s11, %s416_s20  ;;  %p422_p7 = scmp.lt.s32.totalorder %s416_s20, %s416_s20 }
  0x2d   :  { %p423_p8 = por %p422_p7, %p421_p6 }
  0x2f   :  { %p424_p9 = pnand %p423_p8, %p417_p5 }
  0x31   :  { %427 = shalt.err (!%p424_p9)
}
  0x32   :  { %46 = dma.hbm_to_vmem [thread:$0]  %s559_s2, 1024, %s41_s11, [#allocation6], %s458_s24, %s458_s24, %s459_s25  }
  0x33   :  { %450 = dma.done.wait [#allocation3], 512  }
  0x34   :  { %451 = vsyncadd [#allocation3], 4294966784 }
  0x35   :  { %452 = dma.done.wait [#allocation6], 1536  }
  0x36   :  { %453 = vsyncadd [#allocation6], 4294965760  ;;  %v60_v0 = vld [vmem:[#allocation7] sm:$0xff]  ;;  %v61_v1 = vld [vmem:[#allocation7 + $0x8] sm:$0xff]  ;;  %vm64_vm0 = vcmask 261120   ;;  %s461_s2 = smov [#allocation8]  }
  0x37   :  { %v171_v2 = vld [vmem:[#allocation7 + $0x20] sm:$0xff]  ;;  %v340_v3 = vpack.c.bf16 %v61_v1, %v60_v0  ;;  %v172_v4 = vld [vmem:[#allocation7 + $0x28] sm:$0xff]  ;;  %v62_v5 = vld [vmem:[#allocation7 + $0x10] sm:$0xff]  ;;  %s275_s21 = sshll.u32 %s461_s2, 4  ;;  %s276_s21 = int_to_ptr.vmem [resolvable:$true] %s275_s21 }
  0x38   :  { %v63_v6 = vld [vmem:[#allocation7 + $0x18] sm:$0xff]  ;;  %v348_v7 = vpack.c.bf16 %v172_v4, %v171_v2  ;;  %v173_v9 = vld [vmem:[#allocation7 + $0x30] sm:$0xff]  ;;  %v56_v11 = vld [vmem:[#allocation2] sm:$0xff]  ;;  %s428_s22 = scalar_lea.vmem %s276_s21, 512  ;;  %p433_p11 = scmp.lt.s32.totalorder %s276_s21, %s276_s21 }
  0x39   :  { %v344_v8 = vpack.c.bf16 %v63_v6, %v62_v5  ;;  %v174_v10 = vld [vmem:[#allocation7 + $0x38] sm:$0xff]  ;;  %341 = vmatprep.subr.bf16.mxu0 %v340_v3  ;;  %320 = vmatprep.mubr.msk.f32.mxu0 %vm64_vm0, %v56_v11  ;;  %v57_v13 = vld [vmem:[#allocation2 + $0x8] sm:$0xff]  ;;  %v58_v14 = vld [vmem:[#allocation2 + $0x10] sm:$0xff]  ;;  %p429_p10 = scmp.ne.s32.totalorder %s276_s21, %s428_s22  ;;  %p434_p12 = scmp.lt.s32.totalorder %s428_s22, %s428_s22 }
  0x3a   :  { %v352_v12 = vpack.c.bf16 %v174_v10, %v173_v9  ;;  %349 = vmatprep.subr.bf16.mxu1 %v348_v7  ;;  %343 = vmatpush3.bf16.msra.mxu0 %v340_v3  ;;  %v59_v15 = vld [vmem:[#allocation2 + $0x18] sm:$0xff]  ;;  %v163_v20 = vld [vmem:[#allocation5 + $0x8] sm:$0xff]  ;;  %v162_v22 = vld [vmem:[#allocation5] sm:$0xff] }
  0x3b   :  { %351 = vmatpush3.bf16.msra.mxu1 %v348_v7  ;;  %345 = vmatprep.subr.bf16.mxu0 %v344_v8  ;;  %v262_v21 = vld [vmem:[#allocation5 + $0x18] sm:$0xff]  ;;  %v261_v24 = vld [vmem:[#allocation5 + $0x10] sm:$0xff]  ;;  %p435_p13 = por %p434_p12, %p433_p11 }
  0x3c   :  { %353 = vmatprep.subr.bf16.mxu1 %v352_v12  ;;  %334 = vmatprep.mubr.msk.f32.mxu1 %vm64_vm0, %v56_v11 }
  0x3d   :  { %p436_p0 = pnand %p435_p13, %p429_p10 }
  0x3e   :  { %347 = vmatpush3.bf16.msra.mxu0 %v344_v8 }
  0x3f   :  { %355 = vmatpush3.bf16.msra.mxu1 %v352_v12 }
  0x41   :  { %321 = vmatmul.mubr.msk.f32.vlgmr.msra.gmra.mrb[0].mxu0 %vm64_vm0, %v57_v13 }
  0x42   :  { %335 = vmatmul.mubr.msk.f32.vlgmr.msra.gmra.mrb[0].mxu1 %vm64_vm0, %v57_v13  ;;  %323 = vmatprep.mubr.msk.f32.mxu0 %vm64_vm0, %v58_v14 }
  0x43   :  { %337 = vmatprep.mubr.msk.f32.mxu1 %vm64_vm0, %v58_v14 }
  0x45   :  { %324 = vmatmul.mubr.msk.f32.gmra.mrb[2].mxu0 %vm64_vm0, %v59_v15 }
  0x46   :  { %338 = vmatmul.mubr.msk.f32.gmra.mrb[2].mxu1 %vm64_vm0, %v59_v15 }
 0x114   :  { %v322_v16 = vpop.f32.mrb[0].mxu0 }
 0x115   :  { %v336_v17 = vpop.f32.mrb[0].mxu1  ;;  %v143_v18 = vpop.f32.mrb[1].mxu0 }
 0x116   :  { %v241_v19 = vpop.f32.mrb[1].mxu1 }
 0x118   :  { %v325_v23 = vpop.f32.mrb[2].mxu0 }
 0x119   :  { %v165_v25 = vmul.f32 %v325_v23, %v163_v20  ;;  %v339_v26 = vpop.f32.mrb[2].mxu1  ;;  %v153_v27 = vpop.f32.mrb[3].mxu0 }
 0x11a   :  { %v264_v28 = vmul.f32 %v339_v26, %v262_v21  ;;  %v164_v29 = vmul.f32 %v162_v22, %v153_v27  ;;  %v251_v30 = vpop.f32.mrb[3].mxu1 }
 0x11b   :  { %v167_v31 = vadd.f32 %v322_v16, %v165_v25  ;;  %v263_v32 = vmul.f32 %v261_v24, %v251_v30 }
 0x11c   :  { %v266_v33 = vadd.f32 %v336_v17, %v264_v28  ;;  %v166_v34 = vadd.f32 %v164_v29, %v143_v18 }
 0x11d   :  { %169 = vst [vmem:[#allocation8 + $0x8] sm:$0xff] %v167_v31  ;;  %v265_v35 = vadd.f32 %v263_v32, %v241_v19 }
 0x11e   :  { %269 = vst [vmem:[#allocation8 + $0x18] sm:$0xff] %v266_v33  ;;  %168 = vst [vmem:[#allocation8] sm:$0xff] %v166_v34 }
 0x11f   :  { %268 = vst [vmem:[#allocation8 + $0x10] sm:$0xff] %v265_v35 }
 0x120   :  { %439 = shalt.err (!%p436_p0)
}
 0x121   :  { %s440_s27 = scalar_lea.hbm %s560_s3, 512 }
 0x122   :  { %p441_p1 = scmp.ne.s32.totalorder %s560_s3, %s440_s27  ;;  %p444_p2 = scmp.lt.u32.totalorder %s440_s27, %s560_s3 }
 0x124   :  { %p446_p3 = pnand %p444_p2, %p441_p1 }
 0x126   :  { %449 = shalt.err (!%p446_p3)
}
 0x127   :  { %281 = dma.vmem_to_hbm [thread:$0]  %s276_s21, 512, %s560_s3, [#allocation4], %s458_s24, %s458_s24, %s459_s25  }
 0x128   :  { %454 = dma.done.wait [#allocation4], 512  }
 0x129   :  { %455 = vsyncadd [#allocation4], 4294966784 }
 0x12a   :  { %285 = vsyncpa [#allocation3], 1 }
 0x12b   :  { %286 = vsyncpa [#allocation6], 1 }
 0x12c   :  { %287 = vsyncpa [#allocation4], 1 }

</bundles_post_ra>
